<compile_context>
chip_gen: v7x
topology: tpu7x:2x2x1
jax: 0.10.0
libtpu: 0.0.40
codegen_flags: <defaults>
</compile_context>

<pallas_src>
import functools

import numpy as np

import jax
import jax.numpy as jnp
from jax import lax
from jax.experimental import pallas as pl
from jax.experimental.pallas import tpu as pltpu


_LANE = 128     # channel axes are padded to a multiple of 128 and stay padded
_M_PAD = 32     # row (N*H*W) padding granularity (was 256)


# ----------------------------------------------------------------------------
# small helpers
# ----------------------------------------------------------------------------
def _round_up(x, m):
    return (x + m - 1) // m * m


def _pick(n, candidates):
    for c in candidates:
        if n % c == 0:
            return c
    raise ValueError(f"no tile candidate in {candidates} divides {n}")


def _matmul_tiles(Mp, Np, Kp):
    tm = _pick(Mp, (1024, 512, 256, 128, 64, 32))
    # 576/384 catch the K = 9*128 / 9*256 reduction dims of 3x3 convs (previously
    # these fell back to tk=128 -> half-filled MXU passes and 3x the K steps).
    tk = _pick(Kp, (512, 576, 384, 256, 128))
    tn = _pick(Np, (512, 256, 128))
    # Keep the double-buffered bf16 A tile at <= ~1 MiB so the whole kernel stays
    # well inside v5e's 16 MiB / v7x's 32 MiB scoped-VMEM defaults.
    while tm * tk > (1 << 19) and tm > 32:
        tm //= 2
    # Guarantee >= 2 parallel grid tiles where the shape allows it so v7x's
    # second TensorCore gets work (megacore sharding over the parallel axes).
    if Mp // tm == 1 and Np // tn == 1:
        if tn >= 256:
            tn //= 2
        elif tm >= 64:
            tm //= 2
    return tm, tn, tk


def _bn_tiles(Mp, Cp):
    # Lane-dense channel block (full Cp when it fits); VMEM-bounded row block.
    tc = Cp if Cp <= 1024 else _pick(Cp, (1024, 512, 256, 128))
    max_tm = max(32, (1 << 19) // tc)       # per-input tile <= ~1 MiB bf16
    tm = 32
    for cand in (1024, 512, 256, 128, 64, 32):
        if cand <= max_tm and Mp % cand == 0:
            tm = cand
            break
    if Mp // tm == 1 and Cp // tc == 1:     # >= 2 parallel tiles for megacore
        if tm >= 64:
            tm //= 2
        elif tc >= 256:
            tc //= 2
    return tm, tc


# ----------------------------------------------------------------------------
# Pallas kernels
# ----------------------------------------------------------------------------
def _matmul_stats_kernel(a_ref, b_ref, o_ref, s_ref, q_ref, acc_ref):
    """bf16 x bf16 -> f32 accumulate; on the last K step write the bf16 product
    plus per-column sum / sum-of-squares (fused BatchNorm statistics)."""
    @pl.when(pl.program_id(2) == 0)
    def _():
        acc_ref[...] = jnp.zeros_like(acc_ref)

    acc_ref[...] += jnp.dot(a_ref[...], b_ref[...],
                            preferred_element_type=jnp.float32)

    @pl.when(pl.program_id(2) == pl.num_programs(2) - 1)
    def _():
        acc = acc_ref[...]
        o_ref[...] = acc.astype(o_ref.dtype)
        s = jnp.sum(acc, axis=0, keepdims=True)
        q = jnp.sum(acc * acc, axis=0, keepdims=True)
        s_ref[...] = jnp.broadcast_to(s, s_ref.shape)
        q_ref[...] = jnp.broadcast_to(q, q_ref.shape)


def _pallas_matmul_stats(a, b):
    """a: (Mp, Kp) bf16, b: (Kp, Np) bf16; dims tile-aligned.
    Returns (bf16 (Mp,Np) product, f32 column sum (Np,), f32 column sumsq (Np,))."""
    Mp, Kp = a.shape
    Kp2, Np = b.shape
    assert Kp == Kp2
    assert Mp % _M_PAD == 0 and Np % _LANE == 0 and Kp % _LANE == 0, (Mp, Np, Kp)
    tm, tn, tk = _matmul_tiles(Mp, Np, Kp)
    ni, nj, nk = Mp // tm, Np // tn, Kp // tk

    b_idx = lambda i, j, k: (k, j)
    b_spec = pl.BlockSpec((tk, tn), b_idx)
    if nk >= 3:
        # small-M, large-K/N layers are weight-bandwidth bound: a 3rd weight
        # buffer hides the prologue/epilogue DMA for ~tk*tn bf16 of extra VMEM.
        try:
            b_spec = pl.BlockSpec((tk, tn), b_idx, pipeline_mode=pl.Buffered(3))
        except Exception:   # older BlockSpec signature - fall back to default
            b_spec = pl.BlockSpec((tk, tn), b_idx)

    out, s8, q8 = pl.pallas_call(
        _matmul_stats_kernel,
        out_shape=(jax.ShapeDtypeStruct((Mp, Np), jnp.bfloat16),
                   jax.ShapeDtypeStruct((8 * ni, Np), jnp.float32),
                   jax.ShapeDtypeStruct((8 * ni, Np), jnp.float32)),
        grid_spec=pltpu.PrefetchScalarGridSpec(
            num_scalar_prefetch=0,
            grid=(ni, nj, nk),
            in_specs=[pl.BlockSpec((tm, tk), lambda i, j, k: (i, k)),
                      b_spec],
            out_specs=(pl.BlockSpec((tm, tn), lambda i, j, k: (i, j)),
                       pl.BlockSpec((8, tn), lambda i, j, k: (i, j)),
                       pl.BlockSpec((8, tn), lambda i, j, k: (i, j))),
            scratch_shapes=[pltpu.VMEM((tm, tn), jnp.float32)]),
        compiler_params=pltpu.CompilerParams(
            dimension_semantics=("parallel", "parallel", "arbitrary")),
    )(a, b)
    # each i-tile wrote 8 identical partial rows -> divide by 8 (exact in f32)
    colsum = jnp.sum(s8, axis=0) * 0.125
    colsq = jnp.sum(q8, axis=0) * 0.125
    return out, colsum, colsq


def _bn_kernel(x_ref, s_ref, b_ref, *rest, relu, add_pre, add_post):
    """y = x*scale + shift [+ residual]; optional ReLU; [+ post-relu fusion add].
    Arithmetic in f32 (v5e's VPU has no bf16 ALU)."""
    o_ref = rest[-1]
    y = x_ref[...].astype(jnp.float32) * s_ref[...] + b_ref[...]
    k = 0
    if add_pre:
        y = y + rest[k][...].astype(jnp.float32)
        k += 1
    if relu:
        y = jnp.maximum(y, 0.0)
    if add_post:
        y = y + rest[k][...].astype(jnp.float32)
        k += 1
    o_ref[...] = y.astype(o_ref.dtype)


def _bn_flat(xf, scale, shift, res=None, extra=None, relu=True):
    Mp, Cp = xf.shape
    assert Mp % _M_PAD == 0 and Cp % _LANE == 0, (Mp, Cp)
    tm, tc = _bn_tiles(Mp, Cp)
    in_specs = [pl.BlockSpec((tm, tc), lambda i, j: (i, j)),
                pl.BlockSpec((1, tc), lambda i, j: (0, j)),
                pl.BlockSpec((1, tc), lambda i, j: (0, j))]
    args = [xf, scale, shift]
    if res is not None:
        in_specs.append(pl.BlockSpec((tm, tc), lambda i, j: (i, j)))
        args.append(res)
    if extra is not None:
        in_specs.append(pl.BlockSpec((tm, tc), lambda i, j: (i, j)))
        args.append(extra)
    kernel = functools.partial(_bn_kernel, relu=relu,
                               add_pre=res is not None,
                               add_post=extra is not None)
    return pl.pallas_call(
        kernel,
        out_shape=jax.ShapeDtypeStruct((Mp, Cp), jnp.bfloat16),
        grid=(Mp // tm, Cp // tc),
        in_specs=in_specs,
        out_specs=pl.BlockSpec((tm, tc), lambda i, j: (i, j)),
        compiler_params=pltpu.CompilerParams(
            dimension_semantics=("parallel", "parallel")),
    )(*args)


# ----------------------------------------------------------------------------
# layer ops
# ----------------------------------------------------------------------------
def _bn_scale_shift(colsum, colsq, count, gamma, beta, cp, groups=1):
    # training-mode BatchNorm2d: biased batch statistics from the matmul-fused
    # per-column sums.  Padded channels get scale=shift=0 so they stay zero.
    if groups > 1:
        colsum = colsum.reshape(groups, cp).sum(axis=0)
        colsq = colsq.reshape(groups, cp).sum(axis=0)
        count = count * groups
    c = gamma.shape[0]
    mean = colsum[:c] / count
    var = jnp.maximum(colsq[:c] / count - mean * mean, 0.0)
    scale = gamma * lax.rsqrt(var + 1e-5)
    shift = beta - mean * scale
    scale = jnp.pad(scale, (0, cp - c)).reshape(1, cp)
    shift = jnp.pad(shift, (0, cp - c)).reshape(1, cp)
    return scale, shift


def _flat_rows(x, mp):
    n, h, w, c = x.shape
    m = n * h * w
    a = x.reshape(m, c)
    if mp != m:
        a = jnp.pad(a, ((0, mp - m), (0, 0)))
    return a


def _conv_matmul(x, w, kh, kw, stride, pad):
    """x: NHWC (channels already padded for internal layers); w: (Kp, Cout_p) bf16."""
    n, h, wd, c = x.shape
    ho = (h + 2 * pad - kh) // stride + 1
    wo = (wd + 2 * pad - kw) // stride + 1
    if kh == 1 and kw == 1 and stride == 1 and pad == 0:
        patches = x
    else:
        # TODO(synk): im2col is materialized by XLA; fusing it into the matmul
        # (manual DMA per (kh,kw) offset) would cut the 9x/49x HBM blow-up.
        xp = jnp.pad(x, ((0, 0), (pad, pad), (pad, pad), (0, 0)))
        cols = []
        for i in range(kh):
            for j in range(kw):
                cols.append(lax.slice(
                    xp, (0, i, j, 0),
                    (n, i + (ho - 1) * stride + 1, j + (wo - 1) * stride + 1, c),
                    (1, stride, stride, 1)))
        patches = jnp.concatenate(cols, axis=-1)      # (n, ho, wo, kh*kw*c) bf16
    m = n * ho * wo
    k = kh * kw * c
    kp = w.shape[0]
    mp = _round_up(m, _M_PAD)
    a = patches.reshape(m, k)
    if mp != m or kp != k:                            # no-op for internal convs
        a = jnp.pad(a, ((0, mp - m), (0, kp - k)))
    out, colsum, colsq = _pallas_matmul_stats(a.astype(jnp.bfloat16), w)
    return out, colsum, colsq, (n, ho, wo, m, mp)


@functools.partial(jax.jit, static_argnames=("kh", "kw", "stride", "pad", "relu"))
def _conv_bn(x, w, gamma, beta, res, extra, *, kh, kw, stride, pad, relu):
    """conv -> fused-stat BatchNorm -> [+residual] -> [ReLU] -> [+fusion add]."""
    out, colsum, colsq, (n, ho, wo, m, mp) = _conv_matmul(x, w, kh, kw, stride, pad)
    cp = w.shape[1]
    scale, shift = _bn_scale_shift(colsum, colsq, float(m), gamma, beta, cp)
    rf = _flat_rows(res, mp) if res is not None else None
    ef = _flat_rows(extra, mp) if extra is not None else None
    y = _bn_flat(out, scale, shift, res=rf, extra=ef, relu=relu)
    return y[:m].reshape(n, ho, wo, cp)


@jax.jit
def _decoder_up_tail(out2, x, w3, g3, b3, wu, gu, bu):
    """Decoder upsample-block tail: conv3 = ConvTranspose2d(2,2) on out2, residual =
    up_bn(up_convT(x)), final = relu(bn3(conv3) + residual).  Everything happens in
    the pre-pixel-shuffle (M, 4*Cp) layout (channels lane-dense); one shuffle at
    the end produces the 2x upsampled NHWC activation."""
    n, h, w, _ = out2.shape
    m = n * h * w
    mp = _round_up(m, _M_PAD)
    cp = w3.shape[1] // 4
    o3, s3, q3 = _pallas_matmul_stats(_flat_rows(out2, mp), w3)
    ou, su, qu = _pallas_matmul_stats(_flat_rows(x, mp), wu)
    sc3, sh3 = _bn_scale_shift(s3, q3, float(m), g3, b3, cp, groups=4)
    scu, shu = _bn_scale_shift(su, qu, float(m), gu, bu, cp, groups=4)
    resid = _bn_flat(ou, jnp.tile(scu, (1, 4)), jnp.tile(shu, (1, 4)), relu=False)
    final = _bn_flat(o3, jnp.tile(sc3, (1, 4)), jnp.tile(sh3, (1, 4)),
                     res=resid, relu=True)
    # TODO(synk): pixel shuffle left as an XLA transpose instead of being folded
    # into the BN kernel's out_spec.
    y = final[:m].reshape(n, h, w, 2, 2, cp)
    y = jnp.transpose(y, (0, 1, 3, 2, 4, 5)).reshape(n, 2 * h, 2 * w, cp)
    return y


@jax.jit
def _maxpool_3x3_s2(x):
    # TODO(synk): MaxPool2d(3, 2, 1) uses lax.reduce_window glue, not a Pallas kernel.
    return lax.reduce_window(x, jnp.array(-jnp.inf, x.dtype), lax.max,
                             (1, 3, 3, 1), (1, 2, 2, 1),
                             ((0, 0), (1, 1), (1, 1), (0, 0)))


# ----------------------------------------------------------------------------
# deterministic parameter construction (channel-padded bf16 matmul weights)
# ----------------------------------------------------------------------------
class _Init:
    """Deterministic host-side xavier-uniform init (numpy: avoids hundreds of
    tiny device dispatches / compiles during parameter construction)."""

    def __init__(self, seed=0):
        self._rng = np.random.default_rng(seed)

    def xavier(self, shape, fan_in, fan_out):
        bound = float(np.sqrt(6.0 / (fan_in + fan_out)))
        return self._rng.uniform(-bound, bound, size=shape).astype(np.float32)


def _conv_weight_from_torch(w, pad_cin=True):
    # w: (cout, cin, kh, kw) PyTorch layout -> (kh*kw*cin_p, cout_p) matmul weight
    cout, cin, kh, kw = w.shape
    cin_p = _round_up(cin, _LANE) if pad_cin else cin
    cout_p = _round_up(cout, _LANE)
    wt = np.transpose(w, (2, 3, 1, 0))
    wt = np.pad(wt, ((0, 0), (0, 0), (0, cin_p - cin), (0, cout_p - cout)))
    k = kh * kw * cin_p
    kp = _round_up(k, _LANE)
    wmat = wt.reshape(k, cout_p)
    if kp != k:
        wmat = np.pad(wmat, ((0, kp - k), (0, 0)))
    return dict(w=jnp.asarray(wmat, dtype=jnp.bfloat16), kh=kh, kw=kw)


def _conv_from_weight(w, stride, pad, pad_cin=True):
    p = _conv_weight_from_torch(w, pad_cin)
    p.update(stride=stride, pad=pad)
    return p


def _make_conv(init, cin, cout, k, stride=1, pad=0):
    w = init.xavier((cout, cin, k, k), cin * k * k, cout * k * k)
    return _conv_from_weight(w, stride, pad, pad_cin=True)


def _make_convT(init, cin, cout):
    # PyTorch ConvTranspose2d weight layout: (cin, cout, 2, 2).
    # Reorder to (cin, 2, 2, cout) so the matmul output groups are sub-pixel-major
    # with cout on the lane axis (cheap pixel shuffle afterwards).
    w = init.xavier((cin, cout, 2, 2), cout * 4, cin * 4)
    cin_p = _round_up(cin, _LANE)
    cout_p = _round_up(cout, _LANE)
    wr = np.transpose(w, (0, 2, 3, 1))
    wr = np.pad(wr, ((0, cin_p - cin), (0, 0), (0, 0), (0, cout_p - cout)))
    return jnp.asarray(wr.reshape(cin_p, 4 * cout_p), dtype=jnp.bfloat16)


def _make_bn(c):
    # BatchNorm2d with weight=1, bias=0 (as in the module init)
    return dict(gamma=jnp.ones((c,), jnp.float32), beta=jnp.zeros((c,), jnp.float32))


def _apply_conv_bn(conv, bn, x, res=None, extra=None, relu=True):
    return _conv_bn(x, conv["w"], bn["gamma"], bn["beta"], res, extra,
                    kh=conv["kh"], kw=conv["kw"], stride=conv["stride"],
                    pad=conv["pad"], relu=relu)


# ---------------- encoder (torchvision Bottleneck, ResNet-152) ---------------
def _make_bottleneck(init, inplanes, width, stride, downsample):
    p = dict(
        conv1=_make_conv(init, inplanes, width, 1),
        bn1=_make_bn(width),
        conv2=_make_conv(init, width, width, 3, stride=stride, pad=1),
        bn2=_make_bn(width),
        conv3=_make_conv(init, width, width * 4, 1),
        bn3=_make_bn(width * 4),
    )
    if downsample:
        p["ds_conv"] = _make_conv(init, inplanes, width * 4, 1, stride=stride)
        p["ds_bn"] = _make_bn(width * 4)
    return p


def _bottleneck_fwd(p, x, extra=None):
    out = _apply_conv_bn(p["conv1"], p["bn1"], x, relu=True)
    out = _apply_conv_bn(p["conv2"], p["bn2"], out, relu=True)
    if "ds_conv" in p:
        residual = _apply_conv_bn(p["ds_conv"], p["ds_bn"], x, relu=False)
    else:
        residual = x
    # bn3 -> +residual -> relu (-> + thermal fusion when last block of a stage)
    return _apply_conv_bn(p["conv3"], p["bn3"], out, res=residual, extra=extra,
                          relu=True)


def _make_resnet_layer(init, inplanes, width, blocks, stride):
    layer = [_make_bottleneck(init, inplanes, width, stride,
                              downsample=(stride != 1 or inplanes != width * 4))]
    inplanes = width * 4
    for _ in range(blocks - 1):
        layer.append(_make_bottleneck(init, inplanes, width, 1, False))
    return layer, inplanes


# ---------------- decoder (TransBottleneck) ----------------------------------
def _make_trans_plain(init, planes):
    return dict(
        conv1=_make_conv(init, planes, planes, 1),
        bn1=_make_bn(planes),
        conv2=_make_conv(init, planes, planes, 3, stride=1, pad=1),
        bn2=_make_bn(planes),
        conv3=_make_conv(init, planes, planes, 3, stride=1, pad=1),
        bn3=_make_bn(planes),
    )


def _make_trans_up(init, inplanes, planes):
    return dict(
        conv1=_make_conv(init, inplanes, planes, 1),
        bn1=_make_bn(planes),
        conv2=_make_conv(init, planes, planes, 3, stride=1, pad=1),
        bn2=_make_bn(planes),
        conv3_w=_make_convT(init, planes, planes),
        bn3=_make_bn(planes),
        up_w=_make_convT(init, inplanes, planes),
        up_bn=_make_bn(planes),
    )


def _trans_plain_fwd(p, x):
    out = _apply_conv_bn(p["conv1"], p["bn1"], x, relu=True)
    out = _apply_conv_bn(p["conv2"], p["bn2"], out, relu=True)
    return _apply_conv_bn(p["conv3"], p["bn3"], out, res=x, relu=True)


def _trans_up_fwd(p, x):
    out = _apply_conv_bn(p["conv1"], p["bn1"], x, relu=True)
    out = _apply_conv_bn(p["conv2"], p["bn2"], out, relu=True)
    return _decoder_up_tail(out, x,
                            p["conv3_w"], p["bn3"]["gamma"], p["bn3"]["beta"],
                            p["up_w"], p["up_bn"]["gamma"], p["up_bn"]["beta"])


# ---------------- full RTFNet --------------------------------------------------
_RESNET152_LAYERS = ((64, 3, 1), (128, 8, 2), (256, 36, 2), (512, 3, 2))


def build_rtfnet_params(n_class, seed=0):
    init = _Init(seed)
    params = {"n_class": n_class}
    # RGB conv1 (7x7/2, 3->64); thermal conv1 weight = mean over RGB in-channels,
    # exactly mirroring RTFNet.__init__.
    w_rgb = init.xavier((64, 3, 7, 7), 3 * 49, 64 * 49)
    w_th = np.mean(w_rgb, axis=1, keepdims=True)
    params["rgb_conv1"] = _conv_from_weight(w_rgb, stride=2, pad=3, pad_cin=False)
    params["rgb_bn1"] = _make_bn(64)
    params["th_conv1"] = _conv_from_weight(w_th, stride=2, pad=3, pad_cin=False)
    params["th_bn1"] = _make_bn(64)

    for prefix in ("rgb", "th"):
        inplanes = 64
        for idx, (width, blocks, stride) in enumerate(_RESNET152_LAYERS, start=1):
            layer, inplanes = _make_resnet_layer(init, inplanes, width, blocks, stride)
            params[f"{prefix}_layer{idx}"] = layer

    inplanes = 2048
    for idx in range(1, 6):
        planes = n_class if idx == 5 else inplanes // 2
        params[f"deconv{idx}"] = [_make_trans_plain(init, inplanes),
                                  _make_trans_up(init, inplanes, planes)]
        inplanes = planes
    return params


def rtfnet_forward(params, x_nchw):
    """x_nchw: (N, 4, H, W); channels 0..2 = RGB, channel 3 = thermal. Returns NCHW."""
    x = jnp.transpose(x_nchw, (0, 2, 3, 1)).astype(jnp.bfloat16)   # -> NHWC bf16
    rgb_in, th_in = x[..., :3], x[..., 3:4]

    thermal = _apply_conv_bn(params["th_conv1"], params["th_bn1"], th_in, relu=True)
    # `rgb = relu(bn(conv(rgb))) + thermal` fused into the rgb stem's BN kernel
    rgb = _apply_conv_bn(params["rgb_conv1"], params["rgb_bn1"], rgb_in,
                         extra=thermal, relu=True)
    rgb = _maxpool_3x3_s2(rgb)
    thermal = _maxpool_3x3_s2(thermal)

    for idx in range(1, 5):
        for blk in params[f"th_layer{idx}"]:
            thermal = _bottleneck_fwd(blk, thermal)
        rgb_blocks = params[f"rgb_layer{idx}"]
        for bi, blk in enumerate(rgb_blocks):
            # per-stage `rgb = rgb + thermal` fused into the last block's BN kernel
            extra = thermal if bi == len(rgb_blocks) - 1 else None
            rgb = _bottleneck_fwd(blk, rgb, extra=extra)

    fuse = rgb                       # already rgb + thermal after layer4
    for idx in range(1, 6):
        blocks = params[f"deconv{idx}"]
        fuse = _trans_plain_fwd(blocks[0], fuse)
        fuse = _trans_up_fwd(blocks[1], fuse)

    n_class = params["n_class"]
    out = fuse[..., :n_class].astype(jnp.float32)
    return jnp.transpose(out, (0, 3, 1, 2))   # -> NCHW


if __name__ == "__main__":
    N_CLASS = 9
    params = build_rtfnet_params(N_CLASS, seed=0)

    key = jax.random.PRNGKey(0)
    # 32x32 is the smallest spatial size compatible with the /32 encoder and the
    # x32 decoder (layer4 runs at 1x1 and deconv5 restores 32x32).
    x = jax.random.normal(key, (2, 4, 32, 32), jnp.float32)

    out = rtfnet_forward(params, x)
    out = jax.block_until_ready(out)

    assert out.shape == (2, N_CLASS, 32, 32), out.shape
    assert bool(jnp.all(jnp.isfinite(out)))
    print("KERNEL_OK")
</pallas_src>

<mosaic_0001>
module attributes {stable_mosaic.version = 11 : i64} {
  func.func @_matmul_stats_kernel(%arg0: i32, %arg1: i32, %arg2: i32, %arg3: memref<256x128xbf16, #tpu.memory_space<vmem>>, %arg4: memref<128x128xbf16, #tpu.memory_space<vmem>>, %arg5: memref<256x128xbf16, #tpu.memory_space<vmem>>, %arg6: memref<8x128xf32, #tpu.memory_space<vmem>>, %arg7: memref<8x128xf32, #tpu.memory_space<vmem>>, %arg8: memref<256x128xf32, #tpu.memory_space<vmem>>) attributes {dimension_semantics = [#tpu.dimension_semantics<parallel>, #tpu.dimension_semantics<parallel>, #tpu.dimension_semantics<arbitrary>], iteration_bounds = array<i64: 2, 1, 1>, scalar_prefetch = 0 : i64, scratch_operands = 1 : i64, tpu.core_type = #tpu.core_type<tc>, window_params = [{transform_indices = @transform_0, window_bounds = array<i64: 256, 128>}, {transform_indices = @transform_1, window_bounds = array<i64: 128, 128>}, {transform_indices = @transform_2, window_bounds = array<i64: 256, 128>}, {transform_indices = @transform_3, window_bounds = array<i64: 8, 128>}, {transform_indices = @transform_4, window_bounds = array<i64: 8, 128>}]} {
    %c0_i32 = arith.constant 0 : i32
    %0 = arith.cmpi eq, %arg2, %c0_i32 : i32
    %1 = arith.extui %0 : i1 to i32
    %c0_i32_0 = arith.constant 0 : i32
    %2 = arith.cmpi ne, %1, %c0_i32_0 : i32
    scf.if %2 {
      %cst_10 = arith.constant 0.000000e+00 : f32
      %12 = vector.broadcast %cst_10 : f32 to vector<256x128xf32>
      %c0_11 = arith.constant 0 : index
      %c0_12 = arith.constant 0 : index
      %13 = vector.load %arg8[%c0_11, %c0_12] : memref<256x128xf32, #tpu.memory_space<vmem>>, vector<256x128xf32>
      tpu.vector_store %arg8[%c0_11, %c0_12], %12 {strides = array<i32>} : memref<256x128xf32, #tpu.memory_space<vmem>>, vector<256x128xf32>,
    } else {
    }
    %c0 = arith.constant 0 : index
    %c0_1 = arith.constant 0 : index
    %3 = vector.load %arg8[%c0, %c0_1] : memref<256x128xf32, #tpu.memory_space<vmem>>, vector<256x128xf32>
    %c0_2 = arith.constant 0 : index
    %c0_3 = arith.constant 0 : index
    %4 = vector.load %arg3[%c0_2, %c0_3] : memref<256x128xbf16, #tpu.memory_space<vmem>>, vector<256x128xbf16>
    %c0_4 = arith.constant 0 : index
    %c0_5 = arith.constant 0 : index
    %5 = vector.load %arg4[%c0_4, %c0_5] : memref<128x128xbf16, #tpu.memory_space<vmem>>, vector<128x128xbf16>
    %cst = arith.constant dense<0.000000e+00> : vector<256x128xf32>
    %6 = tpu.matmul %4, %5, %cst {dimension_numbers = #tpu.dot_dimension_numbers<[1], [0], [0], [1], [0, 0, 1, 1], [], []>} : vector<256x128xbf16>, vector<128x128xbf16>, vector<256x128xf32> -> vector<256x128xf32>
    %7 = arith.addf %3, %6 : vector<256x128xf32>
    %c0_6 = arith.constant 0 : index
    %c0_7 = arith.constant 0 : index
    %8 = vector.load %arg8[%c0_6, %c0_7] : memref<256x128xf32, #tpu.memory_space<vmem>>, vector<256x128xf32>
    tpu.vector_store %arg8[%c0_6, %c0_7], %7 {strides = array<i32>} : memref<256x128xf32, #tpu.memory_space<vmem>>, vector<256x128xf32>,
    %c0_i32_8 = arith.constant 0 : i32
    %9 = arith.cmpi eq, %arg2, %c0_i32_8 : i32
    %10 = arith.extui %9 : i1 to i32
    %c0_i32_9 = arith.constant 0 : i32
    %11 = arith.cmpi ne, %10, %c0_i32_9 : i32
    scf.if %11 {
      %c0_10 = arith.constant 0 : index
      %c0_11 = arith.constant 0 : index
      %12 = vector.load %arg8[%c0_10, %c0_11] : memref<256x128xf32, #tpu.memory_space<vmem>>, vector<256x128xf32>
      %13 = arith.truncf %12 : vector<256x128xf32> to vector<256x128xbf16>
      %c0_12 = arith.constant 0 : index
      %c0_13 = arith.constant 0 : index
      %14 = vector.load %arg5[%c0_12, %c0_13] : memref<256x128xbf16, #tpu.memory_space<vmem>>, vector<256x128xbf16>
      tpu.vector_store %arg5[%c0_12, %c0_13], %13 {strides = array<i32>} : memref<256x128xbf16, #tpu.memory_space<vmem>>, vector<256x128xbf16>,
      %cst_14 = arith.constant dense<0.000000e+00> : vector<128xf32>
      %15 = vector.multi_reduction <add>, %12, %cst_14 [0] : vector<256x128xf32> to vector<128xf32>
      %16 = vector.shape_cast %15 : vector<128xf32> to vector<1x128xf32>
      %17 = arith.mulf %12, %12 : vector<256x128xf32>
      %cst_15 = arith.constant dense<0.000000e+00> : vector<128xf32>
      %18 = vector.multi_reduction <add>, %17, %cst_15 [0] : vector<256x128xf32> to vector<128xf32>
      %19 = vector.shape_cast %18 : vector<128xf32> to vector<1x128xf32>
      %20 = vector.shape_cast %16 : vector<1x128xf32> to vector<1x128xf32>
      %21 = vector.broadcast %20 : vector<1x128xf32> to vector<8x128xf32>
      %c0_16 = arith.constant 0 : index
      %c0_17 = arith.constant 0 : index
      %22 = vector.load %arg6[%c0_16, %c0_17] : memref<8x128xf32, #tpu.memory_space<vmem>>, vector<8x128xf32>
      tpu.vector_store %arg6[%c0_16, %c0_17], %21 {strides = array<i32>} : memref<8x128xf32, #tpu.memory_space<vmem>>, vector<8x128xf32>,
      %23 = vector.shape_cast %19 : vector<1x128xf32> to vector<1x128xf32>
      %24 = vector.broadcast %23 : vector<1x128xf32> to vector<8x128xf32>
      %c0_18 = arith.constant 0 : index
      %c0_19 = arith.constant 0 : index
      %25 = vector.load %arg7[%c0_18, %c0_19] : memref<8x128xf32, #tpu.memory_space<vmem>>, vector<8x128xf32>
      tpu.vector_store %arg7[%c0_18, %c0_19], %24 {strides = array<i32>} : memref<8x128xf32, #tpu.memory_space<vmem>>, vector<8x128xf32>,
    } else {
    }
    return
  }
  func.func @transform_0(%arg0: i32, %arg1: i32, %arg2: i32) -> (i32, i32) {
    %c0_i32 = arith.constant 0 : i32
    return %arg0, %arg2 : i32, i32
  }
  func.func @transform_1(%arg0: i32, %arg1: i32, %arg2: i32) -> (i32, i32) {
    %c0_i32 = arith.constant 0 : i32
    return %arg2, %arg1 : i32, i32
  }
  func.func @transform_2(%arg0: i32, %arg1: i32, %arg2: i32) -> (i32, i32) {
    %c0_i32 = arith.constant 0 : i32
    return %arg0, %arg1 : i32, i32
  }
  func.func @transform_3(%arg0: i32, %arg1: i32, %arg2: i32) -> (i32, i32) {
    %c0_i32 = arith.constant 0 : i32
    return %arg0, %arg1 : i32, i32
  }
  func.func @transform_4(%arg0: i32, %arg1: i32, %arg2: i32) -> (i32, i32) {
    %c0_i32 = arith.constant 0 : i32
    return %arg0, %arg1 : i32, i32
  }
}

module attributes {stable_mosaic.version = 11 : i64} {
  func.func @_bn_kernel(%arg0: i32, %arg1: i32, %arg2: memref<256x128xbf16, #tpu.memory_space<vmem>>, %arg3: memref<1x128xf32, #tpu.memory_space<vmem>>, %arg4: memref<1x128xf32, #tpu.memory_space<vmem>>, %arg5: memref<256x128xbf16, #tpu.memory_space<vmem>>) attributes {dimension_semantics = [#tpu.dimension_semantics<parallel>, #tpu.dimension_semantics<parallel>], iteration_bounds = array<i64: 2, 1>, scalar_prefetch = 0 : i64, scratch_operands = 0 : i64, tpu.core_type = #tpu.core_type<tc>, window_params = [{transform_indices = @transform_0, window_bounds = array<i64: 256, 128>}, {transform_indices = @transform_1, window_bounds = array<i64: 1, 128>}, {transform_indices = @transform_2, window_bounds = array<i64: 1, 128>}, {transform_indices = @transform_3, window_bounds = array<i64: 256, 128>}]} {
    %c0 = arith.constant 0 : index
    %c0_0 = arith.constant 0 : index
    %0 = vector.load %arg2[%c0, %c0_0] : memref<256x128xbf16, #tpu.memory_space<vmem>>, vector<256x128xbf16>
    %1 = arith.extf %0 : vector<256x128xbf16> to vector<256x128xf32>
    %c0_1 = arith.constant 0 : index
    %c0_2 = arith.constant 0 : index
    %2 = vector.load %arg3[%c0_1, %c0_2] : memref<1x128xf32, #tpu.memory_space<vmem>>, vector<1x128xf32>
    %3 = vector.broadcast %2 : vector<1x128xf32> to vector<256x128xf32>
    %4 = arith.mulf %1, %3 : vector<256x128xf32>
    %c0_3 = arith.constant 0 : index
    %c0_4 = arith.constant 0 : index
    %5 = vector.load %arg4[%c0_3, %c0_4] : memref<1x128xf32, #tpu.memory_space<vmem>>, vector<1x128xf32>
    %6 = vector.broadcast %5 : vector<1x128xf32> to vector<256x128xf32>
    %7 = arith.addf %4, %6 : vector<256x128xf32>
    %cst = arith.constant 0.000000e+00 : f32
    %8 = vector.broadcast %cst : f32 to vector<256x128xf32>
    %9 = arith.maximumf %7, %8 : vector<256x128xf32>
    %10 = arith.truncf %9 : vector<256x128xf32> to vector<256x128xbf16>
    %c0_5 = arith.constant 0 : index
    %c0_6 = arith.constant 0 : index
    %11 = vector.load %arg5[%c0_5, %c0_6] : memref<256x128xbf16, #tpu.memory_space<vmem>>, vector<256x128xbf16>
    tpu.vector_store %arg5[%c0_5, %c0_6], %10 {strides = array<i32>} : memref<256x128xbf16, #tpu.memory_space<vmem>>, vector<256x128xbf16>,
    return
  }
  func.func @transform_0(%arg0: i32, %arg1: i32) -> (i32, i32) {
    %c0_i32 = arith.constant 0 : i32
    return %arg0, %arg1 : i32, i32
  }
  func.func @transform_1(%arg0: i32, %arg1: i32) -> (i32, i32) {
    %c0_i32 = arith.constant 0 : i32
    %c0_i32_0 = arith.constant 0 : i32
    return %c0_i32, %arg1 : i32, i32
  }
  func.func @transform_2(%arg0: i32, %arg1: i32) -> (i32, i32) {
    %c0_i32 = arith.constant 0 : i32
    %c0_i32_0 = arith.constant 0 : i32
    return %c0_i32, %arg1 : i32, i32
  }
  func.func @transform_3(%arg0: i32, %arg1: i32) -> (i32, i32) {
    %c0_i32 = arith.constant 0 : i32
    return %arg0, %arg1 : i32, i32
  }
}

</mosaic_0001>

<bundles_post_ra>
// kernel: _conv_bn.3
= control target key start
LH: loop header
LB: loop body
LE: loop exit
PB: predicated region body
PF: predicated region fallthrough
CT: control target
= control target key end

     0   :  { %8 = vsyncpa [#allocation3], 0  ;;  %s1318_s0 = inlined_call_operand.vmem [shape: bf16[512,128], index: 0, kind: input, shape index: {}]   ;;  %s1319_s1 = inlined_call_operand.vmem [shape: f32[1,128], index: 1, kind: input, shape index: {}]   ;;  %s1320_s2 = inlined_call_operand.vmem [shape: f32[1,128], index: 2, kind: input, shape index: {}]   ;;  %s1321_s3 = inlined_call_operand.hbm [shape: bf16[512,128], index: 3, kind: output, shape index: {}]  }
   0x1   :  { %10 = vsyncpa [#allocation3 + $0x1], 0  ;;  %s1089_s12 = smov 0   ;;  %s1091_s13 = smov 0  }
   0x2   :  { %s1093_s14 = smov 0   ;;  %s1095_s15 = smov 0  }
   0x3   :  { %s1097_s16 = smov 0   ;;  %s1099_s17 = smov 0  }
   0x4 LB: > { %s673_s18 = sadd.s32 4294967295, %s1064_s17   ;;  %s674_s19 = sadd.s32 4294967294, %s1064_s17   ;;  %s1064_s17 = sphi %s1099_s17, %s16_s17   ;;  %s1060_s16 = sphi %s1097_s16, %s1328_s16   ;;  %s1056_s15 = sphi %s1095_s15, %s1327_s15   ;;  %s1052_s14 = sphi %s1093_s14, %s1326_s14   ;;  %s1048_s13 = sphi %s1091_s13, %s1325_s13   ;;  %s1044_s12 = sphi %s1089_s12, %s1324_s12  }
   0x5   : > { %s28_s20 = sadd.s32 1, %s1060_s16  ;;  %s117_s21 = sadd.s32 1, %s1052_s14 }
   0x6   : > { %p30_p0 = scmp.ge.s32.totalorder %s28_s20, 2  ;;  %p127_p1 = scmp.ne.s32.totalorder %s1052_s14, %s1048_s13 }
   0x7   : > { %p128_p2 = scmp.eq.s32.totalorder %s673_s18, 1  ;;  %p133_p3 = scmp.ne.s32.totalorder %s1048_s13, %s1044_s12 }
   0x8   : > { %s1330_s20 = smov (%p30_p0, %s28_s20), 0  ;;  %p134_p5 = scmp.eq.s32.totalorder %s674_s19, 1 }
   0x9   : > { %p1129_p4 = por %p128_p2, %p127_p1  ;;  %s112_s23 = ssub.s32 %s1060_s16, %s1330_s20 }
   0xa   : > { %p679_p6 = scmp.ge.s32.totalorder %s1064_s17, 1  ;;  %p115_p7 = scmp.eq.s32.totalorder %s112_s23, 0 }
   0xb   : > { %p1136_p8 = por %p134_p5, %p133_p3  ;;  %p176_p9 = scmp.lt.s32.totalorder %s1064_s17, 3 }
   0xc   : > { %s1142_s25 = scalar_select %p115_p7, %s1052_s14, %s117_s21  }
   0xd   : > { %p177_p10 = pnand %p679_p6, %p176_p9 }
   0xe   : > { %s681_s26 = sshll.u32 (!%p177_p10), %s1056_s15, 5  ;;  %v1153_v0 = vld [vmem:[%s1319_s1] ss:$0 sm:$0xff] (!%p177_p10)  ;;  %s206_s6 = sand.u32 (!%p177_p10), 1, %s1048_s13  }
   0xf   : > { %180 = sbr.rel (%p177_p10) target bundleno = 82 (0x52), region = 32  ;;  %p210_p11 = scmp.lt.s32.totalorder (!%p177_p10), %s681_s26, 63  ;;  %v1163_v9 = vld [vmem:[%s1320_s2] ss:$0 sm:$0xff] (!%p177_p10) }
  0x10   : > { %s680_s9 = sshll.u32 (!%p177_p10), %s206_s6, 7  ;;  %s754_s11 = sshll.u32 (!%p177_p10), %s1056_s15, 11 }
  0x11   : > { %s1187_s10 = scalar_lea.vmem (!%p177_p10), [#allocation2], %s680_s9  ;;  %s1265_s23 = scalar_lea.hbm (!%p177_p10), %s1321_s3, %s754_s11 }
  0x12   : > { %s574_s18 = sshll.u32 (!%p177_p10), %s1187_s10, 4  ;;  %s1272_s15 = scalar_lea.sflag (!%p177_p10), [#allocation3], %s206_s6  ;;  %s1267_s18 = int_to_ptr.vmem [resolvable:$true] %s574_s18 }
  0x16   : > { %s1332_s26 = smov (!%p210_p11, %s681_s26), 63 }
  0x17   : > { %s682_s27 = sshll.u32 %s1332_s26, 2  ;;  %s986_s26 = scalar_lea.vmem %s1267_s18, 2048 }
  0x18   : > { %s1148_s30 = scalar_lea.vmem %s1318_s0, %s682_s27  ;;  %p987_p12 = scmp.ne.s32.totalorder %s1267_s18, %s986_s26 }
  0x19   : > { %v756_v1 = vld [vmem:[%s1148_s30] sm:$0xff]   ;;  %v899_v2 = vld [vmem:[%s1148_s30 + $0x8] sm:$0xff]   ;;  %v900_v3 = vld [vmem:[%s1148_s30 + $0x10] sm:$0xff]   ;;  %s1066_s27 = smov [#allocation2]  }
  0x1a   : > { %v757_v4 = vunpack.c.l.bf16 %v756_v1  ;;  %v758_v5 = vunpack.c.h.bf16 %v756_v1  ;;  %v761_v6 = vunpack.c.l.bf16 %v899_v2  ;;  %v762_v7 = vunpack.c.h.bf16 %v899_v2  ;;  %v901_v8 = vld [vmem:[%s1148_s30 + $0x18] sm:$0xff]   ;;  %v902_v30 = vld [vmem:[%s1148_s30 + $0x20] sm:$0xff]   ;;  %v903_v35 = vld [vmem:[%s1148_s30 + $0x28] sm:$0xff]   ;;  %p988_p13 = pnand %p987_p12, %p1129_p4  ;;  %s990_s28 = sshll.u32 %s1066_s27, 4  ;;  %s991_s28 = int_to_ptr.vmem [resolvable:$false] %s990_s28 }
  0x1b   : > { %v765_v10 = vunpack.c.l.bf16 %v900_v3  ;;  %v766_v11 = vunpack.c.h.bf16 %v900_v3  ;;  %v769_v12 = vunpack.c.l.bf16 %v901_v8  ;;  %v770_v13 = vunpack.c.h.bf16 %v901_v8  ;;  %v904_v40 = vld [vmem:[%s1148_s30 + $0x30] sm:$0xff]   ;;  %v905_v45 = vld [vmem:[%s1148_s30 + $0x38] sm:$0xff]   ;;  %v906_v3 = vld [vmem:[%s1148_s30 + $0x40] sm:$0xff]   ;;  %s992_s29 = scalar_lea.vmem %s991_s28, 4096  ;;  %p993_p1 = scmp.lt.s32.totalorder %s1267_s18, %s991_s28 }
  0x1c   : > { %v296_v14 = vmul.f32 %v757_v4, %v1153_v0  ;;  %v297_v15 = vmul.f32 %v758_v5, %v1153_v0  ;;  %v298_v16 = vmul.f32 %v761_v6, %v1153_v0  ;;  %v299_v17 = vmul.f32 %v762_v7, %v1153_v0  ;;  %p989_p0 = pneg %p988_p13  ;;  %p994_p2 = scmp.lt.s32.totalorder %s992_s29, %s986_s26 }
  0x1d   : > { %v300_v18 = vmul.f32 %v765_v10, %v1153_v0  ;;  %v301_v19 = vmul.f32 %v766_v11, %v1153_v0  ;;  %v302_v20 = vmul.f32 %v769_v12, %v1153_v0  ;;  %v303_v21 = vmul.f32 %v770_v13, %v1153_v0  ;;  %v907_v13 = vld [vmem:[%s1148_s30 + $0x48] sm:$0xff]  }
  0x1e   : > { %v335_v22 = vadd.f32 %v1163_v9, %v296_v14  ;;  %v336_v23 = vadd.f32 %v1163_v9, %v297_v15  ;;  %v337_v24 = vadd.f32 %v1163_v9, %v298_v16  ;;  %v338_v25 = vadd.f32 %v1163_v9, %v299_v17  ;;  %p995_p3 = por %p994_p2, %p993_p1 }
  0x1f   : > { %v339_v26 = vadd.f32 %v1163_v9, %v300_v18  ;;  %v340_v27 = vadd.f32 %v1163_v9, %v301_v19  ;;  %v341_v28 = vadd.f32 %v1163_v9, %v302_v20  ;;  %v342_v29 = vadd.f32 %v1163_v9, %v303_v21  ;;  %v908_v18 = vld [vmem:[%s1148_s30 + $0x50] sm:$0xff]  }
  0x20   : > { %v367_v31 = vmax.f32 %v335_v22, 0.0  ;;  %v368_v32 = vmax.f32 %v336_v23, 0.0  ;;  %v369_v33 = vmax.f32 %v337_v24, 0.0  ;;  %v370_v34 = vmax.f32 %v338_v25, 0.0  ;;  %v909_v23 = vld [vmem:[%s1148_s30 + $0x58] sm:$0xff]   ;;  %p996_p5 = pnand %p995_p3, %p989_p0 }
  0x21   : > { %v371_v36 = vmax.f32 %v339_v26, 0.0  ;;  %v372_v37 = vmax.f32 %v340_v27, 0.0  ;;  %v373_v38 = vmax.f32 %v341_v28, 0.0  ;;  %v374_v39 = vmax.f32 %v342_v29, 0.0 }
  0x22   : > { %v822_v41 = vpack.c.bf16 %v368_v32, %v367_v31  ;;  %v827_v42 = vpack.c.bf16 %v370_v34, %v369_v33  ;;  %v773_v43 = vunpack.c.l.bf16 %v902_v30  ;;  %v774_v44 = vunpack.c.h.bf16 %v902_v30 }
  0x23   : > { %v832_v46 = vpack.c.bf16 %v372_v37, %v371_v36  ;;  %v837_v47 = vpack.c.bf16 %v374_v39, %v373_v38  ;;  %v777_v48 = vunpack.c.l.bf16 %v903_v35  ;;  %v778_v49 = vunpack.c.h.bf16 %v903_v35 }
  0x24   : > { %823 = vst [vmem:[%s1187_s10] sm:$0xff] %v822_v41   ;;  %914 = vst [vmem:[%s1187_s10 + $0x8] sm:$0xff] %v827_v42   ;;  %v304_v50 = vmul.f32 %v773_v43, %v1153_v0  ;;  %v305_v51 = vmul.f32 %v774_v44, %v1153_v0  ;;  %v781_v52 = vunpack.c.l.bf16 %v904_v40  ;;  %v782_v53 = vunpack.c.h.bf16 %v904_v40  ;;  %v910_v40 = vld [vmem:[%s1148_s30 + $0x60] sm:$0xff]  }
  0x25   : > { %915 = vst [vmem:[%s1187_s10 + $0x10] sm:$0xff] %v832_v46   ;;  %916 = vst [vmem:[%s1187_s10 + $0x18] sm:$0xff] %v837_v47   ;;  %v306_v54 = vmul.f32 %v777_v48, %v1153_v0  ;;  %v307_v55 = vmul.f32 %v778_v49, %v1153_v0  ;;  %v785_v56 = vunpack.c.l.bf16 %v905_v45  ;;  %v786_v57 = vunpack.c.h.bf16 %v905_v45 }
  0x26   : > { %v343_v58 = vadd.f32 %v1163_v9, %v304_v50  ;;  %v344_v59 = vadd.f32 %v1163_v9, %v305_v51  ;;  %v308_v60 = vmul.f32 %v781_v52, %v1153_v0  ;;  %v309_v61 = vmul.f32 %v782_v53, %v1153_v0  ;;  %v911_v53 = vld [vmem:[%s1148_s30 + $0x68] sm:$0xff]  }
  0x27   : > { %v345_v62 = vadd.f32 %v1163_v9, %v306_v54  ;;  %v346_v63 = vadd.f32 %v1163_v9, %v307_v55  ;;  %v310_v1 = vmul.f32 %v785_v56, %v1153_v0  ;;  %v311_v2 = vmul.f32 %v786_v57, %v1153_v0 }
  0x28   : > { %v375_v4 = vmax.f32 %v343_v58, 0.0  ;;  %v376_v5 = vmax.f32 %v344_v59, 0.0  ;;  %v347_v6 = vadd.f32 %v1163_v9, %v308_v60  ;;  %v348_v7 = vadd.f32 %v1163_v9, %v309_v61  ;;  %v912_v58 = vld [vmem:[%s1148_s30 + $0x70] sm:$0xff]  }
  0x29   : > { %v377_v8 = vmax.f32 %v345_v62, 0.0  ;;  %v378_v10 = vmax.f32 %v346_v63, 0.0  ;;  %v349_v11 = vadd.f32 %v1163_v9, %v310_v1  ;;  %v350_v12 = vadd.f32 %v1163_v9, %v311_v2  ;;  %v913_v63 = vld [vmem:[%s1148_s30 + $0x78] sm:$0xff]  }
  0x2a   : > { %v842_v14 = vpack.c.bf16 %v376_v5, %v375_v4  ;;  %v379_v15 = vmax.f32 %v347_v6, 0.0  ;;  %v380_v16 = vmax.f32 %v348_v7, 0.0  ;;  %v789_v17 = vunpack.c.l.bf16 %v906_v3 }
  0x2b   : > { %v847_v19 = vpack.c.bf16 %v378_v10, %v377_v8  ;;  %v381_v20 = vmax.f32 %v349_v11, 0.0  ;;  %v382_v21 = vmax.f32 %v350_v12, 0.0  ;;  %v790_v22 = vunpack.c.h.bf16 %v906_v3 }
  0x2c   : > { %917 = vst [vmem:[%s1187_s10 + $0x20] sm:$0xff] %v842_v14   ;;  %v852_v24 = vpack.c.bf16 %v380_v16, %v379_v15  ;;  %v312_v25 = vmul.f32 %v789_v17, %v1153_v0  ;;  %v793_v26 = vunpack.c.l.bf16 %v907_v13  ;;  %v794_v27 = vunpack.c.h.bf16 %v907_v13 }
  0x2d   : > { %918 = vst [vmem:[%s1187_s10 + $0x28] sm:$0xff] %v847_v19   ;;  %v857_v28 = vpack.c.bf16 %v382_v21, %v381_v20  ;;  %v313_v29 = vmul.f32 %v790_v22, %v1153_v0  ;;  %v797_v30 = vunpack.c.l.bf16 %v908_v18  ;;  %v798_v31 = vunpack.c.h.bf16 %v908_v18 }
  0x2e   : > { %919 = vst [vmem:[%s1187_s10 + $0x30] sm:$0xff] %v852_v24   ;;  %v351_v32 = vadd.f32 %v1163_v9, %v312_v25  ;;  %v314_v33 = vmul.f32 %v793_v26, %v1153_v0  ;;  %v315_v34 = vmul.f32 %v794_v27, %v1153_v0  ;;  %v801_v35 = vunpack.c.l.bf16 %v909_v23 }
  0x2f   : > { %920 = vst [vmem:[%s1187_s10 + $0x38] sm:$0xff] %v857_v28   ;;  %v352_v36 = vadd.f32 %v1163_v9, %v313_v29  ;;  %v316_v37 = vmul.f32 %v797_v30, %v1153_v0  ;;  %v317_v38 = vmul.f32 %v798_v31, %v1153_v0  ;;  %v802_v39 = vunpack.c.h.bf16 %v909_v23 }
  0x30   : > { %v383_v41 = vmax.f32 %v351_v32, 0.0  ;;  %v353_v42 = vadd.f32 %v1163_v9, %v314_v33  ;;  %v354_v43 = vadd.f32 %v1163_v9, %v315_v34  ;;  %v318_v44 = vmul.f32 %v801_v35, %v1153_v0 }
  0x31   : > { %v384_v45 = vmax.f32 %v352_v36, 0.0  ;;  %v355_v46 = vadd.f32 %v1163_v9, %v316_v37  ;;  %v356_v47 = vadd.f32 %v1163_v9, %v317_v38  ;;  %v319_v48 = vmul.f32 %v802_v39, %v1153_v0 }
  0x32   : > { %v385_v49 = vmax.f32 %v353_v42, 0.0  ;;  %v386_v50 = vmax.f32 %v354_v43, 0.0  ;;  %v357_v51 = vadd.f32 %v1163_v9, %v318_v44  ;;  %v805_v52 = vunpack.c.l.bf16 %v910_v40 }
  0x33   : > { %v862_v54 = vpack.c.bf16 %v384_v45, %v383_v41  ;;  %v387_v55 = vmax.f32 %v355_v46, 0.0  ;;  %v388_v56 = vmax.f32 %v356_v47, 0.0  ;;  %v358_v57 = vadd.f32 %v1163_v9, %v319_v48 }
  0x34   : > { %v867_v59 = vpack.c.bf16 %v386_v50, %v385_v49  ;;  %v389_v60 = vmax.f32 %v357_v51, 0.0  ;;  %v806_v61 = vunpack.c.h.bf16 %v910_v40  ;;  %v320_v62 = vmul.f32 %v805_v52, %v1153_v0 }
  0x35   : > { %921 = vst [vmem:[%s1187_s10 + $0x40] sm:$0xff] %v862_v54   ;;  %v872_v1 = vpack.c.bf16 %v388_v56, %v387_v55  ;;  %v390_v2 = vmax.f32 %v358_v57, 0.0  ;;  %v809_v3 = vunpack.c.l.bf16 %v911_v53  ;;  %v810_v4 = vunpack.c.h.bf16 %v911_v53 }
  0x36   : > { %922 = vst [vmem:[%s1187_s10 + $0x48] sm:$0xff] %v867_v59   ;;  %v321_v5 = vmul.f32 %v806_v61, %v1153_v0  ;;  %v359_v6 = vadd.f32 %v1163_v9, %v320_v62  ;;  %v813_v7 = vunpack.c.l.bf16 %v912_v58  ;;  %v814_v8 = vunpack.c.h.bf16 %v912_v58 }
  0x37   : > { %923 = vst [vmem:[%s1187_s10 + $0x50] sm:$0xff] %v872_v1   ;;  %v877_v10 = vpack.c.bf16 %v390_v2, %v389_v60  ;;  %v322_v11 = vmul.f32 %v809_v3, %v1153_v0  ;;  %v323_v12 = vmul.f32 %v810_v4, %v1153_v0  ;;  %v817_v13 = vunpack.c.l.bf16 %v913_v63 }
  0x38   : > { %v360_v14 = vadd.f32 %v1163_v9, %v321_v5  ;;  %v391_v15 = vmax.f32 %v359_v6, 0.0  ;;  %v324_v16 = vmul.f32 %v813_v7, %v1153_v0  ;;  %v325_v17 = vmul.f32 %v814_v8, %v1153_v0 }
  0x39   : > { %924 = vst [vmem:[%s1187_s10 + $0x58] sm:$0xff] %v877_v10   ;;  %v361_v18 = vadd.f32 %v1163_v9, %v322_v11  ;;  %v362_v19 = vadd.f32 %v1163_v9, %v323_v12  ;;  %v818_v20 = vunpack.c.h.bf16 %v913_v63  ;;  %v326_v21 = vmul.f32 %v817_v13, %v1153_v0 }
  0x3a   : > { %v392_v22 = vmax.f32 %v360_v14, 0.0  ;;  %v363_v23 = vadd.f32 %v1163_v9, %v324_v16  ;;  %v364_v24 = vadd.f32 %v1163_v9, %v325_v17 }
  0x3b   : > { %v393_v25 = vmax.f32 %v361_v18, 0.0  ;;  %v394_v26 = vmax.f32 %v362_v19, 0.0  ;;  %v327_v27 = vmul.f32 %v818_v20, %v1153_v0  ;;  %v365_v28 = vadd.f32 %v1163_v9, %v326_v21 }
  0x3c   : > { %v882_v29 = vpack.c.bf16 %v392_v22, %v391_v15  ;;  %v395_v30 = vmax.f32 %v363_v23, 0.0  ;;  %v396_v31 = vmax.f32 %v364_v24, 0.0 }
  0x3d   : > { %v887_v32 = vpack.c.bf16 %v394_v26, %v393_v25  ;;  %v366_v33 = vadd.f32 %v1163_v9, %v327_v27  ;;  %v397_v34 = vmax.f32 %v365_v28, 0.0 }
  0x3e   : > { %925 = vst [vmem:[%s1187_s10 + $0x60] sm:$0xff] %v882_v29   ;;  %v892_v35 = vpack.c.bf16 %v396_v31, %v395_v30 }
  0x3f   : > { %926 = vst [vmem:[%s1187_s10 + $0x68] sm:$0xff] %v887_v32   ;;  %v398_v36 = vmax.f32 %v366_v33, 0.0 }
  0x40   : > { %927 = vst [vmem:[%s1187_s10 + $0x70] sm:$0xff] %v892_v35  }
  0x41   : > { %v897_v0 = vpack.c.bf16 %v398_v36, %v397_v34 }
  0x43   : > { %928 = vst [vmem:[%s1187_s10 + $0x78] sm:$0xff] %v897_v0  }
  0x44   : > { %999 = shalt.err (!%p996_p5)
}
  0x45   : > { %s1000_s30 = scalar_lea.hbm %s1265_s23, 2048  ;;  %s1004_s6 = scalar_lea.hbm %s1321_s3, 4096 }
  0x46   : > { %p1001_p6 = scmp.ne.s32.totalorder %s1265_s23, %s1000_s30  ;;  %p1005_p10 = scmp.lt.u32.totalorder %s1265_s23, %s1321_s3 }
  0x47   : > { %p1006_p11 = scmp.lt.u32.totalorder %s1004_s6, %s1000_s30  ;;  %p1008_p13 = scmp.lt.u32.totalorder %s1000_s30, %s1265_s23 }
  0x48   : > { %p1002_p7 = pnand %p1001_p6, %p1129_p4 }
  0x49   : > { %p1007_p12 = por %p1006_p11, %p1005_p10 }
  0x4a   : > { %p1003_p9 = pneg %p1002_p7 }
  0x4b   : > { %p1009_p0 = por %p1008_p13, %p1007_p12 }
  0x4d   : > { %p1010_p1 = pnand %p1009_p0, %p1003_p9 }
  0x4f   : > { %1013 = shalt.err (!%p1010_p1)
}
  0x50   : > { %s1067_s9 = smov 64   ;;  %s1068_s10 = smov 4  }
  0x51   : > { %929 = dma.vmem_to_hbm [thread:$0]  (%p1129_p4), %s1267_s18, 2048, %s1265_s23, %s1272_s15, %s1067_s9, %s1067_s9, %s1068_s10  }
  0x52 PF: > { %p935_p2 = scmp.ge.s32.totalorder %s1064_s17, 2  ;;  %s589_s11 = sand.u32 1, %s1044_s12  }
  0x53   : > { %s590_s19 = scalar_lea.sflag [#allocation3], %s589_s11 }
  0x54   : > { %p932_p3 = pnand %p935_p2, %p1136_p8 }
  0x56   : > { %1039 = dma.done.wait (!%p932_p3), %s590_s19, 2048  }
  0x57   : > { %1041 = vsyncadd (!%p932_p3), %s590_s19, 4294965248  ;;  %s16_s17 = sadd.s32 1, %s1064_s17   ;;  %s1324_s12 = smov %s1048_s13 }
  0x58   : > { %p13_p5 = scmp.ge.s32.totalorder %s16_s17, 4   ;;  %s1325_s13 = smov %s1052_s14 }
  0x59   : > { %s1326_s14 = smov %s1142_s25  ;;  %s1327_s15 = smov %s1060_s16 }
  0x5a   : > { %s1328_s16 = smov %s1330_s20  ;;  %15 = sbr.rel (!%p13_p5) target bundleno = 4 (0x4), region = 73 }
  0x61   :  { %595 = vsyncpa [#allocation3], 1 }
  0x62   :  { %597 = vsyncpa [#allocation3 + $0x1], 1 }

// kernel: _conv_bn.2
= control target key start
LH: loop header
LB: loop body
LE: loop exit
PB: predicated region body
PF: predicated region fallthrough
CT: control target
= control target key end

     0   :  { %s1661_s15 = smov 0   ;;  %s1663_s16 = smov 0   ;;  %s1856_s0 = inlined_call_operand.vmem [shape: bf16[512,128], index: 0, kind: input, shape index: {}]   ;;  %s1857_s1 = inlined_call_operand.vmem [shape: bf16[128,128], index: 1, kind: input, shape index: {}]   ;;  %s1858_s2 = inlined_call_operand.vmem [shape: bf16[512,128], index: 2, kind: output, shape index: {0}]   ;;  %s1859_s3 = inlined_call_operand.vmem [shape: f32[16,128], index: 3, kind: output, shape index: {1}]   ;;  %s1860_s4 = inlined_call_operand.vmem [shape: f32[16,128], index: 4, kind: output, shape index: {2}]  }
   0x1   :  { %s1665_s17 = smov 0  }
   0x2 LB: > { %s34_s18 = sadd.s32 1, %s1630_s16  ;;  %p1284_p0 = scmp.ge.s32.totalorder %s1634_s17, 1  ;;  %s1634_s17 = sphi %s1665_s17, %s15_s17   ;;  %s1630_s16 = sphi %s1663_s16, %s1862_s16   ;;  %s1626_s15 = sphi %s1661_s15, %s1861_s15  }
   0x3   : > { %p36_p1 = scmp.ge.s32.totalorder %s34_s18, 2  ;;  %p214_p2 = scmp.lt.s32.totalorder %s1634_s17, 3 }
   0x5   : > { %s1864_s18 = smov (%p36_p1, %s34_s18), 0  ;;  %p215_p3 = pnand %p1284_p0, %p214_p2 }
   0x6   : > { %v1588_v0 = vld [vmem:[%s1857_s1] sm:$0xff] (!%p215_p3)   ;;  %s1285_s21 = sshll.u32 (!%p215_p3), %s1626_s15, 5  ;;  %v1589_v1 = vld [vmem:[%s1857_s1 + $0x8] sm:$0xff] (!%p215_p3)   ;;  %v1590_v2 = vld [vmem:[%s1857_s1 + $0x10] sm:$0xff] (!%p215_p3)   ;;  %p295_p5 = scmp.lt.s32.totalorder (!%p215_p3), %s1626_s15, 1 }
   0x7   : > { %218 = sbr.rel (%p215_p3) target bundleno = 331 (0x14b), region = 28  ;;  %p269_p4 = scmp.lt.s32.totalorder (!%p215_p3), %s1285_s21, 63  ;;  %1500 = vmatprep.subr.bf16.mxu0 (!%p215_p3), %v1588_v0  ;;  %1548 = vmatprep.subr.bf16.mxu1 (!%p215_p3), %v1588_v0  ;;  %v1591_v3 = vld [vmem:[%s1857_s1 + $0x18] sm:$0xff] (!%p215_p3)   ;;  %v1592_v5 = vld [vmem:[%s1857_s1 + $0x20] sm:$0xff] (!%p215_p3)   ;;  %v1593_v6 = vld [vmem:[%s1857_s1 + $0x28] sm:$0xff] (!%p215_p3)  }
   0x8   : > { %1501 = vmatpush3.bf16.msra.mxu0 (!%p215_p3), %v1588_v0  ;;  %1556 = vmatpush3.bf16.msra.mxu1 (!%p215_p3), %v1588_v0  ;;  %v1594_v8 = vld [vmem:[%s1857_s1 + $0x30] sm:$0xff] (!%p215_p3)   ;;  %v1595_v9 = vld [vmem:[%s1857_s1 + $0x38] sm:$0xff] (!%p215_p3)  }
   0x9   : > { %1502 = vmatprep.subr.bf16.mxu0 (!%p215_p3), %v1589_v1  ;;  %1549 = vmatprep.subr.bf16.mxu1 (!%p215_p3), %v1589_v1 }
   0xc   : > { %1503 = vmatpush3.bf16.msra.mxu0 (!%p215_p3), %v1589_v1  ;;  %1557 = vmatpush3.bf16.msra.mxu1 (!%p215_p3), %v1589_v1 }
   0xd   : > { %1504 = vmatprep.subr.bf16.mxu0 (!%p215_p3), %v1590_v2  ;;  %1550 = vmatprep.subr.bf16.mxu1 (!%p215_p3), %v1590_v2 }
   0xe   : > { %s1866_s21 = smov (!%p269_p4, %s1285_s21), 63  ;;  %s1868_s15 = smov (!%p295_p5, %s1626_s15), 1 }
   0xf   : > { %s1286_s26 = sshll.u32 %s1866_s21, 2  ;;  %s1289_s21 = sshll.u32 %s1868_s15, 3 }
  0x10   : > { %s1699_s29 = scalar_lea.vmem %s1856_s0, %s1286_s26  ;;  %1505 = vmatpush3.bf16.msra.mxu0 %v1590_v2  ;;  %1558 = vmatpush3.bf16.msra.mxu1 %v1590_v2  ;;  %s1741_s20 = scalar_lea.vmem %s1858_s2, %s1286_s26 }
  0x11   : > { %v1596_v4 = vld [vmem:[%s1699_s29] sm:$0xff]   ;;  %1506 = vmatprep.subr.bf16.mxu0 %v1591_v3  ;;  %1551 = vmatprep.subr.bf16.mxu1 %v1591_v3  ;;  %v1597_v10 = vld [vmem:[%s1699_s29 + $0x8] sm:$0xff]   ;;  %v1598_v12 = vld [vmem:[%s1699_s29 + $0x10] sm:$0xff]   ;;  %s301_s24 = scalar_lea.vmem %s1859_s3, %s1289_s21  ;;  %s308_s27 = scalar_lea.vmem %s1860_s4, %s1289_s21 }
  0x12   : > { %1516 = vmatprep.mubr.bf16.mxu0 %v1596_v4  ;;  %v1604_v7 = vld [vmem:[%s1699_s29 + $0x40] sm:$0xff]   ;;  %v1605_v11 = vld [vmem:[%s1699_s29 + $0x48] sm:$0xff]   ;;  %v1606_v13 = vld [vmem:[%s1699_s29 + $0x50] sm:$0xff]  }
  0x13   : > { %1532 = vmatprep.mubr.bf16.mxu1 %v1604_v7  ;;  %v1599_v14 = vld [vmem:[%s1699_s29 + $0x18] sm:$0xff]   ;;  %v1600_v16 = vld [vmem:[%s1699_s29 + $0x20] sm:$0xff]   ;;  %v1601_v18 = vld [vmem:[%s1699_s29 + $0x28] sm:$0xff]  }
  0x14   : > { %1507 = vmatpush3.bf16.msra.mxu0 %v1591_v3  ;;  %1559 = vmatpush3.bf16.msra.mxu1 %v1591_v3  ;;  %v1607_v15 = vld [vmem:[%s1699_s29 + $0x58] sm:$0xff]   ;;  %v1608_v17 = vld [vmem:[%s1699_s29 + $0x60] sm:$0xff]   ;;  %v1609_v19 = vld [vmem:[%s1699_s29 + $0x68] sm:$0xff]  }
  0x15   : > { %1508 = vmatprep.subr.bf16.mxu0 %v1592_v5  ;;  %1552 = vmatprep.subr.bf16.mxu1 %v1592_v5  ;;  %v1602_v20 = vld [vmem:[%s1699_s29 + $0x30] sm:$0xff]   ;;  %v1603_v22 = vld [vmem:[%s1699_s29 + $0x38] sm:$0xff]  }
  0x16   : > { %v1610_v21 = vld [vmem:[%s1699_s29 + $0x70] sm:$0xff]   ;;  %v1611_v23 = vld [vmem:[%s1699_s29 + $0x78] sm:$0xff]  }
  0x18   : > { %1509 = vmatpush3.bf16.msra.mxu0 %v1592_v5  ;;  %1560 = vmatpush3.bf16.msra.mxu1 %v1592_v5 }
  0x19   : > { %1510 = vmatprep.subr.bf16.mxu0 %v1593_v6  ;;  %1553 = vmatprep.subr.bf16.mxu1 %v1593_v6 }
  0x1c   : > { %1511 = vmatpush3.bf16.msra.mxu0 %v1593_v6  ;;  %1561 = vmatpush3.bf16.msra.mxu1 %v1593_v6 }
  0x1d   : > { %1512 = vmatprep.subr.bf16.mxu0 %v1594_v8  ;;  %1554 = vmatprep.subr.bf16.mxu1 %v1594_v8 }
  0x20   : > { %1513 = vmatpush3.bf16.msra.mxu0 %v1594_v8  ;;  %1562 = vmatpush3.bf16.msra.mxu1 %v1594_v8 }
  0x21   : > { %1514 = vmatprep.subr.bf16.mxu0 %v1595_v9  ;;  %1555 = vmatprep.subr.bf16.mxu1 %v1595_v9 }
  0x24   : > { %1515 = vmatpush3.bf16.msra.mxu0 %v1595_v9  ;;  %1563 = vmatpush3.bf16.msra.mxu1 %v1595_v9 }
  0x27   : > { %1517 = vmatmul.mubr.bf16.vlgmr.msra.gmra.mrb[0].mxu0 %v1597_v10  ;;  %1533 = vmatmul.mubr.bf16.vlgmr.msra.gmra.mrb[0].mxu1 %v1605_v11 }
  0x28   : > { %1520 = vmatprep.mubr.bf16.mxu0 %v1598_v12  ;;  %1536 = vmatprep.mubr.bf16.mxu1 %v1606_v13 }
  0x2f   : > { %1521 = vmatmul.mubr.bf16.gmra.mrb[4].mxu0 %v1599_v14  ;;  %1537 = vmatmul.mubr.bf16.gmra.mrb[4].mxu1 %v1607_v15 }
  0x30   : > { %1524 = vmatprep.mubr.bf16.mxu0 %v1600_v16  ;;  %1540 = vmatprep.mubr.bf16.mxu1 %v1608_v17 }
  0x37   : > { %1525 = vmatmul.mubr.bf16.gmra.mrb[8].mxu0 %v1601_v18  ;;  %1541 = vmatmul.mubr.bf16.gmra.mrb[8].mxu1 %v1609_v19 }
  0x38   : > { %1528 = vmatprep.mubr.bf16.mxu0 %v1602_v20  ;;  %1544 = vmatprep.mubr.bf16.mxu1 %v1610_v21 }
  0x3f   : > { %1529 = vmatmul.mubr.bf16.gmra.mrb[12].mxu0 %v1603_v22  ;;  %1545 = vmatmul.mubr.bf16.gmra.mrb[12].mxu1 %v1611_v23 }
  0xfa   : > { %v1518_v24 = vpop.f32.mrb[0].mxu0  ;;  %v1732_v25 = vpop.f32.mrb[0].mxu1 }
  0xfb   : > { %v604_v26 = vpop.f32.mrb[1].mxu0  ;;  %v1734_v27 = vpop.f32.mrb[1].mxu1  ;;  %v1029_v39 = vmul.f32 %v1518_v24, %v1518_v24 }
  0xfc   : > { %v1519_v28 = vpop.f32.mrb[2].mxu0  ;;  %v1743_v29 = vpop.f32.mrb[2].mxu1  ;;  %v1027_v30 = vmul.f32 %v604_v26, %v604_v26 }
  0xfd   : > { %v1389_v31 = vpack.c.bf16 %v1519_v28, %v1518_v24  ;;  %v607_v32 = vpop.f32.mrb[3].mxu0  ;;  %v1429_v33 = vpack.c.bf16 %v1743_v29, %v1732_v25  ;;  %v1747_v34 = vpop.f32.mrb[3].mxu1  ;;  %v1030_v42 = vmul.f32 %v1519_v28, %v1519_v28 }
  0xfe   : > { %v1384_v35 = vpack.c.bf16 %v607_v32, %v604_v26  ;;  %v990_v36 = vadd.f32 %v607_v32, %v604_v26  ;;  %v1028_v37 = vmul.f32 %v607_v32, %v607_v32  ;;  %v1424_v38 = vpack.c.bf16 %v1747_v34, %v1734_v27 }
  0xff   : > { %1461 = vst [vmem:[%s1741_s20 + $0x8] sm:$0xff] %v1389_v31   ;;  %1469 = vst [vmem:[%s1741_s20 + $0x48] sm:$0xff] %v1429_v33  }
 0x100   : > { %1385 = vst [vmem:[%s1741_s20] sm:$0xff] %v1384_v35   ;;  %v991_v40 = vadd.f32 %v1518_v24, %v990_v36  ;;  %v1059_v41 = vadd.f32 %v1028_v37, %v1027_v30  ;;  %1468 = vst [vmem:[%s1741_s20 + $0x40] sm:$0xff] %v1424_v38  }
 0x102   : > { %v1060_v43 = vadd.f32 %v1059_v41, %v1029_v39  ;;  %v1522_v44 = vpop.f32.mrb[4].mxu0  ;;  %v992_v45 = vadd.f32 %v1519_v28, %v991_v40  ;;  %v1755_v46 = vpop.f32.mrb[4].mxu1 }
 0x103   : > { %v620_v47 = vpop.f32.mrb[5].mxu0  ;;  %v1757_v48 = vpop.f32.mrb[5].mxu1  ;;  %v1033_v63 = vmul.f32 %v1522_v44, %v1522_v44 }
 0x104   : > { %v993_v49 = vadd.f32 %v992_v45, %v620_v47  ;;  %v1031_v50 = vmul.f32 %v620_v47, %v620_v47  ;;  %v1061_v51 = vadd.f32 %v1060_v43, %v1030_v42  ;;  %v1523_v52 = vpop.f32.mrb[6].mxu0  ;;  %v1759_v53 = vpop.f32.mrb[6].mxu1 }
 0x105   : > { %v1399_v54 = vpack.c.bf16 %v1523_v52, %v1522_v44  ;;  %v623_v55 = vpop.f32.mrb[7].mxu0  ;;  %v1439_v56 = vpack.c.bf16 %v1759_v53, %v1755_v46  ;;  %v1763_v57 = vpop.f32.mrb[7].mxu1  ;;  %v1034_v2 = vmul.f32 %v1523_v52, %v1523_v52 }
 0x106   : > { %v1062_v58 = vadd.f32 %v1061_v51, %v1031_v50  ;;  %v1394_v59 = vpack.c.bf16 %v623_v55, %v620_v47  ;;  %v994_v60 = vadd.f32 %v993_v49, %v623_v55  ;;  %v1032_v61 = vmul.f32 %v623_v55, %v623_v55 }
 0x107   : > { %1463 = vst [vmem:[%s1741_s20 + $0x18] sm:$0xff] %v1399_v54   ;;  %1471 = vst [vmem:[%s1741_s20 + $0x58] sm:$0xff] %v1439_v56   ;;  %v1434_v62 = vpack.c.bf16 %v1763_v57, %v1757_v48 }
 0x108   : > { %1462 = vst [vmem:[%s1741_s20 + $0x10] sm:$0xff] %v1394_v59   ;;  %v995_v0 = vadd.f32 %v1522_v44, %v994_v60  ;;  %v1063_v1 = vadd.f32 %v1062_v58, %v1032_v61  ;;  %v1043_v61 = vmul.f32 %v1734_v27, %v1734_v27 }
 0x109   : > { %1470 = vst [vmem:[%s1741_s20 + $0x50] sm:$0xff] %v1434_v62  }
 0x10a   : > { %v1064_v3 = vadd.f32 %v1063_v1, %v1033_v63  ;;  %v1526_v4 = vpop.f32.mrb[8].mxu0  ;;  %v996_v5 = vadd.f32 %v1523_v52, %v995_v0  ;;  %v1771_v6 = vpop.f32.mrb[8].mxu1 }
 0x10b   : > { %v636_v7 = vpop.f32.mrb[9].mxu0  ;;  %v1773_v8 = vpop.f32.mrb[9].mxu1  ;;  %v1037_v23 = vmul.f32 %v1526_v4, %v1526_v4 }
 0x10c   : > { %v997_v9 = vadd.f32 %v996_v5, %v636_v7  ;;  %v1035_v10 = vmul.f32 %v636_v7, %v636_v7  ;;  %v1065_v11 = vadd.f32 %v1064_v3, %v1034_v2  ;;  %v1527_v12 = vpop.f32.mrb[10].mxu0  ;;  %v1775_v13 = vpop.f32.mrb[10].mxu1  ;;  %v1044_v2 = vmul.f32 %v1747_v34, %v1747_v34 }
 0x10d   : > { %v1409_v14 = vpack.c.bf16 %v1527_v12, %v1526_v4  ;;  %v639_v15 = vpop.f32.mrb[11].mxu0  ;;  %v1449_v16 = vpack.c.bf16 %v1775_v13, %v1771_v6  ;;  %v1779_v17 = vpop.f32.mrb[11].mxu1  ;;  %v1038_v28 = vmul.f32 %v1527_v12, %v1527_v12  ;;  %v1045_v3 = vmul.f32 %v1732_v25, %v1732_v25 }
 0x10e   : > { %v1066_v18 = vadd.f32 %v1065_v11, %v1035_v10  ;;  %v1404_v19 = vpack.c.bf16 %v639_v15, %v636_v7  ;;  %v998_v20 = vadd.f32 %v997_v9, %v639_v15  ;;  %v1036_v21 = vmul.f32 %v639_v15, %v639_v15 }
 0x10f   : > { %1465 = vst [vmem:[%s1741_s20 + $0x28] sm:$0xff] %v1409_v14   ;;  %1473 = vst [vmem:[%s1741_s20 + $0x68] sm:$0xff] %v1449_v16   ;;  %v1444_v22 = vpack.c.bf16 %v1779_v17, %v1773_v8  ;;  %v1046_v7 = vmul.f32 %v1743_v29, %v1743_v29  ;;  %v1048_v15 = vmul.f32 %v1763_v57, %v1763_v57 }
 0x110   : > { %1464 = vst [vmem:[%s1741_s20 + $0x20] sm:$0xff] %v1404_v19   ;;  %v999_v24 = vadd.f32 %v1526_v4, %v998_v20  ;;  %v1067_v26 = vadd.f32 %v1066_v18, %v1036_v21 }
 0x111   : > { %1472 = vst [vmem:[%s1741_s20 + $0x60] sm:$0xff] %v1444_v22  }
 0x112   : > { %v1068_v30 = vadd.f32 %v1067_v26, %v1037_v23  ;;  %v1530_v31 = vpop.f32.mrb[12].mxu0  ;;  %v1000_v32 = vadd.f32 %v1527_v12, %v999_v24  ;;  %v1787_v33 = vpop.f32.mrb[12].mxu1  ;;  %v1052_v24 = vmul.f32 %v1779_v17, %v1779_v17 }
 0x113   : > { %v652_v35 = vpop.f32.mrb[13].mxu0  ;;  %v716_v36 = vpop.f32.mrb[13].mxu1  ;;  %v1041_v54 = vmul.f32 %v1530_v31, %v1530_v31 }
 0x114   : > { %v1001_v37 = vadd.f32 %v1000_v32, %v652_v35  ;;  %v1039_v38 = vmul.f32 %v652_v35, %v652_v35  ;;  %v1069_v39 = vadd.f32 %v1068_v30, %v1038_v28  ;;  %v1531_v40 = vpop.f32.mrb[14].mxu0  ;;  %v1789_v41 = vpop.f32.mrb[14].mxu1 }
 0x115   : > { %v1419_v42 = vpack.c.bf16 %v1531_v40, %v1530_v31  ;;  %v655_v43 = vpop.f32.mrb[15].mxu0  ;;  %v1459_v44 = vpack.c.bf16 %v1789_v41, %v1787_v33  ;;  %v719_v45 = vpop.f32.mrb[15].mxu1  ;;  %v1042_v58 = vmul.f32 %v1531_v40, %v1531_v40 }
 0x116   : > { %v1070_v47 = vadd.f32 %v1069_v39, %v1039_v38  ;;  %v1414_v49 = vpack.c.bf16 %v655_v43, %v652_v35  ;;  %v1002_v50 = vadd.f32 %v1001_v37, %v655_v43  ;;  %v1040_v51 = vmul.f32 %v655_v43, %v655_v43 }
 0x117   : > { %1467 = vst [vmem:[%s1741_s20 + $0x38] sm:$0xff] %v1419_v42   ;;  %1475 = vst [vmem:[%s1741_s20 + $0x78] sm:$0xff] %v1459_v44   ;;  %v1454_v52 = vpack.c.bf16 %v719_v45, %v716_v36  ;;  %v1057_v39 = vmul.f32 %v1787_v33, %v1787_v33  ;;  %v1058_v42 = vmul.f32 %v1789_v41, %v1789_v41 }
 0x118   : > { %1466 = vst [vmem:[%s1741_s20 + $0x30] sm:$0xff] %v1414_v49   ;;  %v1003_v55 = vadd.f32 %v1530_v31, %v1002_v50  ;;  %v1071_v56 = vadd.f32 %v1070_v47, %v1040_v51  ;;  %v1055_v31 = vmul.f32 %v716_v36, %v716_v36 }
 0x119   : > { %1474 = vst [vmem:[%s1741_s20 + $0x70] sm:$0xff] %v1454_v52  }
 0x11a   : > { %v1072_v59 = vadd.f32 %v1071_v56, %v1041_v54  ;;  %v1004_v60 = vadd.f32 %v1531_v40, %v1003_v55 }
 0x11c   : > { %v1005_v62 = vadd.f32 %v1004_v60, %v1734_v27  ;;  %v1073_v63 = vadd.f32 %v1072_v59, %v1042_v58  ;;  %v1047_v27 = vmul.f32 %v1757_v48, %v1757_v48 }
 0x11e   : > { %v1074_v0 = vadd.f32 %v1073_v63, %v1043_v61  ;;  %v1006_v1 = vadd.f32 %v1005_v62, %v1747_v34 }
 0x120   : > { %v1007_v4 = vadd.f32 %v1732_v25, %v1006_v1  ;;  %v1075_v5 = vadd.f32 %v1074_v0, %v1044_v2  ;;  %v1049_v25 = vmul.f32 %v1755_v46, %v1755_v46 }
 0x122   : > { %v1076_v9 = vadd.f32 %v1075_v5, %v1045_v3  ;;  %v1008_v10 = vadd.f32 %v1743_v29, %v1007_v4  ;;  %v1050_v29 = vmul.f32 %v1759_v53, %v1759_v53 }
 0x124   : > { %v1009_v11 = vadd.f32 %v1008_v10, %v1757_v48  ;;  %v1077_v12 = vadd.f32 %v1076_v9, %v1046_v7  ;;  %v1051_v48 = vmul.f32 %v1773_v8, %v1773_v8 }
 0x126   : > { %v1078_v14 = vadd.f32 %v1077_v12, %v1047_v27  ;;  %v1010_v34 = vadd.f32 %v1009_v11, %v1763_v57 }
 0x128   : > { %v1011_v16 = vadd.f32 %v1755_v46, %v1010_v34  ;;  %v1079_v18 = vadd.f32 %v1078_v14, %v1048_v15  ;;  %v1053_v46 = vmul.f32 %v1771_v6, %v1771_v6 }
 0x12a   : > { %v1080_v19 = vadd.f32 %v1079_v18, %v1049_v25  ;;  %v1012_v20 = vadd.f32 %v1759_v53, %v1011_v16  ;;  %v1054_v53 = vmul.f32 %v1775_v13, %v1775_v13 }
 0x12c   : > { %v1013_v21 = vadd.f32 %v1012_v20, %v1773_v8  ;;  %v1081_v22 = vadd.f32 %v1080_v19, %v1050_v29 }
 0x12e   : > { %v1082_v23 = vadd.f32 %v1081_v22, %v1051_v48  ;;  %v1014_v57 = vadd.f32 %v1013_v21, %v1779_v17  ;;  %v1056_v17 = vmul.f32 %v719_v45, %v719_v45 }
 0x130   : > { %v1015_v26 = vadd.f32 %v1771_v6, %v1014_v57  ;;  %v1083_v28 = vadd.f32 %v1082_v23, %v1052_v24 }
 0x132   : > { %v1084_v30 = vadd.f32 %v1083_v28, %v1053_v46  ;;  %v1016_v8 = vadd.f32 %v1775_v13, %v1015_v26 }
 0x134   : > { %v1017_v32 = vadd.f32 %v1016_v8, %v716_v36  ;;  %v1085_v35 = vadd.f32 %v1084_v30, %v1054_v53 }
 0x136   : > { %v1086_v37 = vadd.f32 %v1085_v35, %v1055_v31  ;;  %v1018_v38 = vadd.f32 %v1017_v32, %v719_v45 }
 0x138   : > { %v1019_v40 = vadd.f32 %v1787_v33, %v1018_v38  ;;  %v1087_v6 = vadd.f32 %v1086_v37, %v1056_v17 }
 0x13a   : > { %v1020_v43 = vadd.f32 %v1789_v41, %v1019_v40  ;;  %v1088_v13 = vadd.f32 %v1087_v6, %v1057_v39 }
 0x13c   : > { %v1021_v44 = vrot.slane %v1020_v43, 4  ;;  %v1089_v47 = vadd.f32 %v1088_v13, %v1058_v42 }
 0x13e   : > { %v1022_v36 = vadd.f32 %v1021_v44, %v1020_v43  ;;  %v1090_v49 = vrot.slane %v1089_v47, 4 }
 0x140   : > { %v1023_v50 = vrot.slane %v1022_v36, 2  ;;  %v1091_v45 = vadd.f32 %v1090_v49, %v1089_v47 }
 0x142   : > { %v1024_v51 = vadd.f32 %v1023_v50, %v1022_v36  ;;  %v1092_v52 = vrot.slane %v1091_v45, 2 }
 0x144   : > { %v1025_v54 = vrot.slane %v1024_v51, 1  ;;  %v1093_v33 = vadd.f32 %v1092_v52, %v1091_v45 }
 0x146   : > { %v1026_v55 = vadd.f32 %v1025_v54, %v1024_v51  ;;  %v1094_v56 = vrot.slane %v1093_v33, 1 }
 0x148   : > { %v1095_v41 = vadd.f32 %v1094_v56, %v1093_v33  ;;  %1096 = vst [vmem:[%s301_s24] sm:$0xff] %v1026_v55 }
 0x14a   : > { %1097 = vst [vmem:[%s308_s27] sm:$0xff] %v1095_v41 }
 0x14b PF: > { %s15_s17 = sadd.s32 1, %s1634_s17   ;;  %s1861_s15 = smov %s1630_s16 }
 0x14c   : > { %p12_p6 = scmp.ge.s32.totalorder %s15_s17, 4   ;;  %s1862_s16 = smov %s1864_s18 }
 0x14e   :  { %14 = sbr.rel (!%p12_p6) target bundleno = 2 (0x2), region = 93 }

</bundles_post_ra>
